<compile_context>
chip_gen: v7x
topology: tpu7x:2x2x1
jax: 0.10.0
libtpu: 0.0.40
codegen_flags: <defaults>
</compile_context>

<pallas_src>
import jax
import jax.numpy as jnp
import numpy as np
from jax.experimental import pallas as pl
from jax.experimental.pallas import tpu as pltpu

LAMBDA = 0.01        # sparsity_threshold (softshrink lambda)
LEAKY_SLOPE = 0.01   # nn.LeakyReLU default


def _softshrink(y, lam):
    return jnp.where(y > lam, y - lam,
                     jnp.where(y < -lam, y + lam, jnp.zeros_like(y)))


# ---------------------------------------------------------------------------
# Fused kernel: rfft+residual -> diag complex MLP -> softshrink -> irfft
#               -> flatten -> Linear -> LeakyReLU -> Linear
# Layout: rows m = n*B + b (feature-major), lanes = (freq|time, embed).
# ---------------------------------------------------------------------------
def frets_fused_kernel(x_ref, a_ref, dri_ref, coef_ref, w1_ref, w2_ref,
                       bias_ref, o_ref):
    fe2 = dri_ref.shape[0]              # 2 * Fp * E
    fe = fe2 // 2                       # Fp * E
    bsz = o_ref.shape[0]                # B
    n_feat = x_ref.shape[0] // bsz      # N
    hdim = w1_ref.shape[1] // n_feat    # H

    x = x_ref[...]                                     # (M, T) f32

    # (1) One bf16 MXU matmul: rfft (real|imag lanes) AND the residual
    #     broadcast over embed, all in x @ [cos | sin | kron(I_T, 1_E)].
    xa = jnp.dot(x.astype(jnp.bfloat16), a_ref[...],
                 preferred_element_type=jnp.float32)   # (M, 2*FE + TE)
    xri = xa[:, :fe2]                                  # [real | imag]
    xres = xa[:, fe2:]                                 # residual, (M, TE)

    # (2) FreMLP on the combined [real|imag] slab; the cross term needs
    #     [imag | real] which a single lane roll (XLU slot) provides.
    #     coef rows: [rd|rd], [-id|+id], [rb|ib]   (f32 on the VPU)
    rolled = pltpu.roll(xri, shift=fe, axis=1)         # [imag | real]
    o = xri * coef_ref[0:1, :] + rolled * coef_ref[1:2, :] + coef_ref[2:3, :]
    o = _softshrink(jax.nn.relu(o), LAMBDA)            # (M, 2*FE)

    # (3) irfft: one matmul against stacked [Dr ; Di] (padded-freq rows are
    #     exactly zero), plus the residual term from (1).
    y = jnp.dot(o.astype(jnp.bfloat16), dri_ref[...],
                preferred_element_type=jnp.float32) + xres   # (M, T*E)

    # (4) fc1 as ONE matmul against W1'(TE, N*H) with
    #     W1'[te, n*H + h] = w1[n*TE + te, h]; hidden = sum of the N diagonal
    #     (B, H) blocks — VPU selects/adds, no extra tiny MXU launches.
    z = jnp.dot(y.astype(jnp.bfloat16), w1_ref[...],
                preferred_element_type=jnp.float32)    # (M, N*H)
    hidden = bias_ref[0:1, :hdim]                      # b1, broadcast over B
    for n in range(n_feat):                            # static unroll, N small
        hidden = hidden + z[n * bsz:(n + 1) * bsz,
                            n * hdim:(n + 1) * hdim]
    hidden = jnp.where(hidden > 0, hidden, LEAKY_SLOPE * hidden)  # LeakyReLU

    # (5) fc2 -> lane-dense (B, Cp) logits (bf16 MXU, f32 accumulate).
    out = jnp.dot(hidden.astype(jnp.bfloat16), w2_ref[...],
                  preferred_element_type=jnp.float32) + bias_ref[1:2, :]
    o_ref[...] = out.astype(o_ref.dtype)


# ---------------------------------------------------------------------------
# Wrapper: precomputes the (expanded) DFT matrices / packed coefficients and
# calls one fused pallas_call.  Jit-compile so the constant prep fuses.
# ---------------------------------------------------------------------------
def backbone_frets_forward(x, r2, i2, rb2, ib2, w1, b1, w2, b2, embed_size):
    B, T, N = x.shape
    F = T // 2 + 1
    E = embed_size
    Fp = ((F + 7) // 8) * 8              # frequency dim padded to sublane mult.
    M = N * B                            # rows m = n*B + b (feature-major)
    TE = T * E
    FE = Fp * E
    H = w1.shape[1]
    C = w2.shape[1]
    Cp = ((max(C, H) + 127) // 128) * 128   # lane-dense head width

    f32, bf16 = jnp.float32, jnp.bfloat16
    x = x.astype(f32)
    x_mt = jnp.transpose(x, (2, 0, 1)).reshape(M, T)   # x_mt[n*B+b, t] = x[b,t,n]

    # real-DFT / inverse real-DFT matrices (ortho norm), zero-padded to Fp.
    t_idx = jnp.arange(T, dtype=f32)
    f_idx = jnp.arange(F, dtype=f32)
    ang = 2.0 * jnp.pi * jnp.outer(t_idx, f_idx) / T            # (T, F)
    s = 1.0 / jnp.sqrt(jnp.float32(T))
    ccos = jnp.cos(ang) * s                                     # rfft real
    csin = -jnp.sin(ang) * s                                    # rfft imag
    fi = jnp.arange(F)
    wgt = jnp.where((fi == 0) | ((T % 2 == 0) & (fi == T // 2)), 1.0, 2.0)
    drt = jnp.cos(ang) * wgt * s                                # irfft, real coeff
    dit = -jnp.sin(ang) * wgt * s                               # irfft, imag coeff
    padf = [(0, 0), (0, Fp - F)]
    ccos_p, csin_p = jnp.pad(ccos, padf), jnp.pad(csin, padf)
    drt_p, dit_p = jnp.pad(drt, padf), jnp.pad(dit, padf)

    # merged rfft + residual matrix, expanded over embed (bf16; rmat is exact 0/1)
    rmat = jnp.kron(jnp.eye(T, dtype=f32), jnp.ones((1, E), f32))   # (T, TE)
    a_mat = jnp.concatenate([jnp.repeat(ccos_p, E, axis=1),
                             jnp.repeat(csin_p, E, axis=1),
                             rmat], axis=1).astype(bf16)            # (T, 2*FE+TE)

    # stacked irfft matrix [Dr ; Di], block-diagonal over embed; the rows for
    # padded frequencies are exactly zero (keeps padded lanes from contributing).
    eye_e = jnp.eye(E, dtype=f32)
    dri = jnp.concatenate([jnp.kron(drt_p.T, eye_e),
                           jnp.kron(dit_p.T, eye_e)],
                          axis=0).astype(bf16)                      # (2*FE, TE)

    # FreMLP diag coefficients / biases packed for the [real | imag] lane layout
    rd = jnp.tile(jnp.diagonal(r2).astype(f32), Fp)                 # (FE,)
    idg = jnp.tile(jnp.diagonal(i2).astype(f32), Fp)
    rbv = jnp.tile(rb2.astype(f32), Fp)
    ibv = jnp.tile(ib2.astype(f32), Fp)
    coef = jnp.stack([jnp.concatenate([rd, rd]),
                      jnp.concatenate([-idg, idg]),
                      jnp.concatenate([rbv, ibv])], axis=0)          # (3, 2*FE)

    # fc1 weights rearranged so one matmul covers all features:
    #   W1'[te, n*H + h] = w1[n*TE + te, h]
    w1p = jnp.transpose(w1.astype(f32).reshape(N, TE, H),
                        (1, 0, 2)).reshape(TE, N * H).astype(bf16)   # (TE, N*H)
    w2p = jnp.pad(w2.astype(f32), [(0, 0), (0, Cp - C)]).astype(bf16)  # (H, Cp)
    biases = jnp.stack([jnp.pad(b1.astype(f32), (0, Cp - H)),
                        jnp.pad(b2.astype(f32), (0, Cp - C))], axis=0)  # (2, Cp)

    def _full(shape):
        return pl.BlockSpec(shape, lambda i: (0,) * len(shape))

    out_p = pl.pallas_call(
        frets_fused_kernel,
        out_shape=jax.ShapeDtypeStruct((B, Cp), f32),
        grid_spec=pltpu.PrefetchScalarGridSpec(
            num_scalar_prefetch=0,
            grid=(1,),
            in_specs=[_full((M, T)),
                      _full((T, 2 * FE + TE)),
                      _full((2 * FE, TE)),
                      _full((3, 2 * FE)),
                      _full((TE, N * H)),
                      _full((H, Cp)),
                      _full((2, Cp))],
            out_specs=_full((B, Cp))),
        compiler_params=pltpu.CompilerParams(
            dimension_semantics=("arbitrary",)),
    )(x_mt, a_mat, dri, coef, w1p, w2p, biases)
    return out_p[:, :C]


# ---------------------------------------------------------------------------
# Pure-JAX reference (jnp.fft) for the correctness check
# ---------------------------------------------------------------------------
def reference_forward(x, r2, i2, rb2, ib2, w1, b1, w2, b2):
    B, T, N = x.shape
    xp = jnp.transpose(x, (0, 2, 1))[..., None]               # (B, N, T, 1)
    bias = xp
    Xf = jnp.fft.rfft(xp, axis=2, norm='ortho')               # (B, N, F, 1)
    rd = jnp.diagonal(r2)
    idg = jnp.diagonal(i2)
    o_real = jax.nn.relu(Xf.real * rd - Xf.imag * idg + rb2)
    o_imag = jax.nn.relu(Xf.imag * rd + Xf.real * idg + ib2)
    o_real = _softshrink(o_real, LAMBDA)
    o_imag = _softshrink(o_imag, LAMBDA)
    y = o_real + 1j * o_imag
    xt = jnp.fft.irfft(y, n=T, axis=2, norm='ortho')          # (B, N, T, E)
    xt = xt + bias
    xf = xt.reshape(B, -1)
    h = xf @ w1 + b1
    h = jnp.where(h > 0, h, LEAKY_SLOPE * h)
    return h @ w2 + b2


if __name__ == "__main__":
    # n_steps=8, n_features=4, embed_size=32, hidden_size=32, n_classes=3, B=2
    B, T, N = 2, 8, 4
    E, H, C = 32, 32, 3
    scale = 0.02

    key = jax.random.PRNGKey(0)
    ks = jax.random.split(key, 9)
    r2 = scale * jax.random.normal(ks[0], (E, E), jnp.float32)
    i2 = scale * jax.random.normal(ks[1], (E, E), jnp.float32)
    rb2 = scale * jax.random.normal(ks[2], (E,), jnp.float32)
    ib2 = scale * jax.random.normal(ks[3], (E,), jnp.float32)
    # TODO(synk): r1/i1/rb1/ib1 (MLP_channel) are unreachable in the reference
    # forward (bool compared to '0'), so they are intentionally not created.
    D_in = N * T * E
    w1 = scale * jax.random.normal(ks[4], (D_in, H), jnp.float32)
    b1 = scale * jax.random.normal(ks[5], (H,), jnp.float32)
    w2 = scale * jax.random.normal(ks[6], (H, C), jnp.float32)
    b2 = scale * jax.random.normal(ks[7], (C,), jnp.float32)

    x = jax.random.normal(ks[8], (B, T, N), jnp.float32)      # (B, n_steps, n_features)

    frets_forward = jax.jit(backbone_frets_forward,
                            static_argnames=("embed_size",))
    out = frets_forward(x, r2, i2, rb2, ib2, w1, b1, w2, b2, embed_size=E)
    out = jax.block_until_ready(out)

    ref = reference_forward(x, r2, i2, rb2, ib2, w1, b1, w2, b2)
    np.testing.assert_allclose(np.asarray(out), np.asarray(ref),
                               rtol=5e-2, atol=5e-2)
    print("KERNEL_OK")
</pallas_src>

<mosaic_0001>
module attributes {stable_mosaic.version = 11 : i64} {
  func.func @frets_fused_kernel(%arg0: i32, %arg1: memref<8x8xf32, #tpu.memory_space<vmem>>, %arg2: memref<8x768xbf16, #tpu.memory_space<vmem>>, %arg3: memref<512x256xbf16, #tpu.memory_space<vmem>>, %arg4: memref<3x512xf32, #tpu.memory_space<vmem>>, %arg5: memref<256x128xbf16, #tpu.memory_space<vmem>>, %arg6: memref<32x128xbf16, #tpu.memory_space<vmem>>, %arg7: memref<2x128xf32, #tpu.memory_space<vmem>>, %arg8: memref<2x128xf32, #tpu.memory_space<vmem>>) attributes {dimension_semantics = [#tpu.dimension_semantics<arbitrary>], iteration_bounds = array<i64: 1>, scalar_prefetch = 0 : i64, scratch_operands = 0 : i64, tpu.core_type = #tpu.core_type<tc>, window_params = [{pipeline_mode = #tpu.pipeline_mode<synchronous>, transform_indices = @transform_0, window_bounds = array<i64: 8, 8>}, {pipeline_mode = #tpu.pipeline_mode<synchronous>, transform_indices = @transform_1, window_bounds = array<i64: 8, 768>}, {pipeline_mode = #tpu.pipeline_mode<synchronous>, transform_indices = @transform_2, window_bounds = array<i64: 512, 256>}, {pipeline_mode = #tpu.pipeline_mode<synchronous>, transform_indices = @transform_3, window_bounds = array<i64: 3, 512>}, {pipeline_mode = #tpu.pipeline_mode<synchronous>, transform_indices = @transform_4, window_bounds = array<i64: 256, 128>}, {pipeline_mode = #tpu.pipeline_mode<synchronous>, transform_indices = @transform_5, window_bounds = array<i64: 32, 128>}, {pipeline_mode = #tpu.pipeline_mode<synchronous>, transform_indices = @transform_6, window_bounds = array<i64: 2, 128>}, {pipeline_mode = #tpu.pipeline_mode<synchronous>, transform_indices = @transform_7, window_bounds = array<i64: 2, 128>}]} {
    %c0 = arith.constant 0 : index
    %c0_0 = arith.constant 0 : index
    %0 = vector.load %arg1[%c0, %c0_0] : memref<8x8xf32, #tpu.memory_space<vmem>>, vector<8x8xf32>
    %1 = arith.truncf %0 : vector<8x8xf32> to vector<8x8xbf16>
    %c0_1 = arith.constant 0 : index
    %c0_2 = arith.constant 0 : index
    %2 = vector.load %arg2[%c0_1, %c0_2] : memref<8x768xbf16, #tpu.memory_space<vmem>>, vector<8x768xbf16>
    %cst = arith.constant dense<0.000000e+00> : vector<8x768xf32>
    %3 = tpu.matmul %1, %2, %cst {dimension_numbers = #tpu.dot_dimension_numbers<[1], [0], [0], [1], [0, 0, 1, 1], [], []>} : vector<8x8xbf16>, vector<8x768xbf16>, vector<8x768xf32> -> vector<8x768xf32>
    %4 = vector.extract_strided_slice %3 {offsets = [0, 0], sizes = [8, 512], strides = [1, 1]} : vector<8x768xf32> to vector<8x512xf32>
    %5 = vector.extract_strided_slice %3 {offsets = [0, 512], sizes = [8, 256], strides = [1, 1]} : vector<8x768xf32> to vector<8x256xf32>
    %c256_i32 = arith.constant 256 : i32
    %6 = tpu.dynamic_rotate %4 by %c256_i32 dim 1 : vector<8x512xf32>, i32 -> vector<8x512xf32>
    %c0_3 = arith.constant 0 : index
    %c0_4 = arith.constant 0 : index
    %7 = vector.load %arg4[%c0_3, %c0_4] : memref<3x512xf32, #tpu.memory_space<vmem>>, vector<1x512xf32>
    %8 = vector.broadcast %7 : vector<1x512xf32> to vector<8x512xf32>
    %9 = arith.mulf %4, %8 : vector<8x512xf32>
    %c1 = arith.constant 1 : index
    %c0_5 = arith.constant 0 : index
    %10 = vector.load %arg4[%c1, %c0_5] : memref<3x512xf32, #tpu.memory_space<vmem>>, vector<1x512xf32>
    %11 = vector.broadcast %10 : vector<1x512xf32> to vector<8x512xf32>
    %12 = arith.mulf %6, %11 : vector<8x512xf32>
    %13 = arith.addf %9, %12 : vector<8x512xf32>
    %c2 = arith.constant 2 : index
    %c0_6 = arith.constant 0 : index
    %14 = vector.load %arg4[%c2, %c0_6] : memref<3x512xf32, #tpu.memory_space<vmem>>, vector<1x512xf32>
    %15 = vector.broadcast %14 : vector<1x512xf32> to vector<8x512xf32>
    %16 = arith.addf %13, %15 : vector<8x512xf32>
    %cst_7 = arith.constant 0.000000e+00 : f32
    %17 = vector.broadcast %cst_7 : f32 to vector<8x512xf32>
    %18 = arith.maximumf %16, %17 : vector<8x512xf32>
    %cst_8 = arith.constant 0.00999999977 : f32
    %19 = vector.broadcast %cst_8 : f32 to vector<8x512xf32>
    %20 = arith.cmpf ogt, %18, %19 : vector<8x512xf32>
    %cst_9 = arith.constant 0.00999999977 : f32
    %21 = vector.broadcast %cst_9 : f32 to vector<8x512xf32>
    %22 = arith.subf %18, %21 : vector<8x512xf32>
    %cst_10 = arith.constant -0.00999999977 : f32
    %23 = vector.broadcast %cst_10 : f32 to vector<8x512xf32>
    %24 = arith.cmpf olt, %18, %23 : vector<8x512xf32>
    %cst_11 = arith.constant 0.00999999977 : f32
    %25 = vector.broadcast %cst_11 : f32 to vector<8x512xf32>
    %26 = arith.addf %18, %25 : vector<8x512xf32>
    %cst_12 = arith.constant 0.000000e+00 : f32
    %27 = vector.broadcast %cst_12 : f32 to vector<8x512xf32>
    %28 = arith.select %24, %26, %27 : vector<8x512xi1>, vector<8x512xf32>
    %29 = arith.select %20, %22, %28 : vector<8x512xi1>, vector<8x512xf32>
    %30 = arith.truncf %29 : vector<8x512xf32> to vector<8x512xbf16>
    %c0_13 = arith.constant 0 : index
    %c0_14 = arith.constant 0 : index
    %31 = vector.load %arg3[%c0_13, %c0_14] : memref<512x256xbf16, #tpu.memory_space<vmem>>, vector<512x256xbf16>
    %cst_15 = arith.constant dense<0.000000e+00> : vector<8x256xf32>
    %32 = tpu.matmul %30, %31, %cst_15 {dimension_numbers = #tpu.dot_dimension_numbers<[1], [0], [0], [1], [0, 0, 1, 1], [], []>} : vector<8x512xbf16>, vector<512x256xbf16>, vector<8x256xf32> -> vector<8x256xf32>
    %33 = arith.addf %32, %5 : vector<8x256xf32>
    %34 = arith.truncf %33 : vector<8x256xf32> to vector<8x256xbf16>
    %c0_16 = arith.constant 0 : index
    %c0_17 = arith.constant 0 : index
    %35 = vector.load %arg5[%c0_16, %c0_17] : memref<256x128xbf16, #tpu.memory_space<vmem>>, vector<256x128xbf16>
    %cst_18 = arith.constant dense<0.000000e+00> : vector<8x128xf32>
    %36 = tpu.matmul %34, %35, %cst_18 {dimension_numbers = #tpu.dot_dimension_numbers<[1], [0], [0], [1], [0, 0, 1, 1], [], []>} : vector<8x256xbf16>, vector<256x128xbf16>, vector<8x128xf32> -> vector<8x128xf32>
    %c0_19 = arith.constant 0 : index
    %c0_20 = arith.constant 0 : index
    %37 = vector.load %arg7[%c0_19, %c0_20] : memref<2x128xf32, #tpu.memory_space<vmem>>, vector<1x32xf32>
    %38 = vector.extract_strided_slice %36 {offsets = [0, 0], sizes = [2, 32], strides = [1, 1]} : vector<8x128xf32> to vector<2x32xf32>
    %39 = vector.broadcast %37 : vector<1x32xf32> to vector<2x32xf32>
    %40 = arith.addf %39, %38 : vector<2x32xf32>
    %41 = vector.extract_strided_slice %36 {offsets = [2, 32], sizes = [2, 32], strides = [1, 1]} : vector<8x128xf32> to vector<2x32xf32>
    %42 = arith.addf %40, %41 : vector<2x32xf32>
    %43 = vector.extract_strided_slice %36 {offsets = [4, 64], sizes = [2, 32], strides = [1, 1]} : vector<8x128xf32> to vector<2x32xf32>
    %44 = arith.addf %42, %43 : vector<2x32xf32>
    %45 = vector.extract_strided_slice %36 {offsets = [6, 96], sizes = [2, 32], strides = [1, 1]} : vector<8x128xf32> to vector<2x32xf32>
    %46 = arith.addf %44, %45 : vector<2x32xf32>
    %cst_21 = arith.constant 0.000000e+00 : f32
    %47 = vector.broadcast %cst_21 : f32 to vector<2x32xf32>
    %48 = arith.cmpf ogt, %46, %47 : vector<2x32xf32>
    %cst_22 = arith.constant 0.00999999977 : f32
    %49 = vector.broadcast %cst_22 : f32 to vector<2x32xf32>
    %50 = arith.mulf %49, %46 : vector<2x32xf32>
    %51 = arith.select %48, %46, %50 : vector<2x32xi1>, vector<2x32xf32>
    %52 = arith.truncf %51 : vector<2x32xf32> to vector<2x32xbf16>
    %c0_23 = arith.constant 0 : index
    %c0_24 = arith.constant 0 : index
    %53 = vector.load %arg6[%c0_23, %c0_24] : memref<32x128xbf16, #tpu.memory_space<vmem>>, vector<32x128xbf16>
    %cst_25 = arith.constant dense<0.000000e+00> : vector<2x128xf32>
    %54 = tpu.matmul %52, %53, %cst_25 {dimension_numbers = #tpu.dot_dimension_numbers<[1], [0], [0], [1], [0, 0, 1, 1], [], []>} : vector<2x32xbf16>, vector<32x128xbf16>, vector<2x128xf32> -> vector<2x128xf32>
    %c1_26 = arith.constant 1 : index
    %c0_27 = arith.constant 0 : index
    %55 = vector.load %arg7[%c1_26, %c0_27] : memref<2x128xf32, #tpu.memory_space<vmem>>, vector<1x128xf32>
    %56 = vector.broadcast %55 : vector<1x128xf32> to vector<2x128xf32>
    %57 = arith.addf %54, %56 : vector<2x128xf32>
    %c0_28 = arith.constant 0 : index
    %c0_29 = arith.constant 0 : index
    %58 = vector.load %arg8[%c0_28, %c0_29] : memref<2x128xf32, #tpu.memory_space<vmem>>, vector<2x128xf32>
    tpu.vector_store %arg8[%c0_28, %c0_29], %57 {strides = array<i32>} : memref<2x128xf32, #tpu.memory_space<vmem>>, vector<2x128xf32>,
    return
  }
  func.func @transform_0(%arg0: i32) -> (i32, i32) {
    %c0_i32 = arith.constant 0 : i32
    %c0_i32_0 = arith.constant 0 : i32
    %c0_i32_1 = arith.constant 0 : i32
    return %c0_i32, %c0_i32_0 : i32, i32
  }
  func.func @transform_1(%arg0: i32) -> (i32, i32) {
    %c0_i32 = arith.constant 0 : i32
    %c0_i32_0 = arith.constant 0 : i32
    %c0_i32_1 = arith.constant 0 : i32
    return %c0_i32, %c0_i32_0 : i32, i32
  }
  func.func @transform_2(%arg0: i32) -> (i32, i32) {
    %c0_i32 = arith.constant 0 : i32
    %c0_i32_0 = arith.constant 0 : i32
    %c0_i32_1 = arith.constant 0 : i32
    return %c0_i32, %c0_i32_0 : i32, i32
  }
  func.func @transform_3(%arg0: i32) -> (i32, i32) {
    %c0_i32 = arith.constant 0 : i32
    %c0_i32_0 = arith.constant 0 : i32
    %c0_i32_1 = arith.constant 0 : i32
    return %c0_i32, %c0_i32_0 : i32, i32
  }
  func.func @transform_4(%arg0: i32) -> (i32, i32) {
    %c0_i32 = arith.constant 0 : i32
    %c0_i32_0 = arith.constant 0 : i32
    %c0_i32_1 = arith.constant 0 : i32
    return %c0_i32, %c0_i32_0 : i32, i32
  }
  func.func @transform_5(%arg0: i32) -> (i32, i32) {
    %c0_i32 = arith.constant 0 : i32
    %c0_i32_0 = arith.constant 0 : i32
    %c0_i32_1 = arith.constant 0 : i32
    return %c0_i32, %c0_i32_0 : i32, i32
  }
  func.func @transform_6(%arg0: i32) -> (i32, i32) {
    %c0_i32 = arith.constant 0 : i32
    %c0_i32_0 = arith.constant 0 : i32
    %c0_i32_1 = arith.constant 0 : i32
    return %c0_i32, %c0_i32_0 : i32, i32
  }
  func.func @transform_7(%arg0: i32) -> (i32, i32) {
    %c0_i32 = arith.constant 0 : i32
    %c0_i32_0 = arith.constant 0 : i32
    %c0_i32_1 = arith.constant 0 : i32
    return %c0_i32, %c0_i32_0 : i32, i32
  }
}

</mosaic_0001>

<bundles_post_ra>
// kernel: tile.28
= control target key start
LH: loop header
LB: loop body
LE: loop exit
PB: predicated region body
PF: predicated region fallthrough
CT: control target
= control target key end

     0   :  { %s22_s0 = inlined_call_operand.vmem [shape: f32[32], index: 0, kind: input, shape index: {}]   ;;  %s23_s1 = inlined_call_operand.vmem [shape: f32[8,32], index: 1, kind: output, shape index: {}]  }
   0x1   :  { %v4_v0 = vld [vmem:[%s22_s0] ss:$0 sm:$0xff] }
   0x2   :  { %5 = vst [vmem:[%s23_s1] sm:$0xff] %v4_v0 }

// kernel: tile.29
= control target key start
LH: loop header
LB: loop body
LE: loop exit
PB: predicated region body
PF: predicated region fallthrough
CT: control target
= control target key end

     0   :  { %s7_s6 = smov 3  ;;  %s14_s9 = smov 3  ;;  %vm4_vm0 = vcmask 261120   ;;  %vm11_vm1 = vcmask 1048320   ;;  %vm18_vm2 = vcmask 785920   ;;  %vm25_vm3 = vcmask 523520   ;;  %s67_s0 = inlined_call_operand.vmem [shape: f32[8,32], index: 0, kind: input, shape index: {}]   ;;  %s68_s1 = inlined_call_operand.vmem [shape: f32[256], index: 1, kind: output, shape index: {}]  }
   0x1   :  { %v33_v0 = vld [vmem:[%s67_s0 + $0x3] ss:$4 sm:%s7_s6]   ;;  %s39_s10 = smov 96   ;;  %s21_s11 = smov 3  ;;  %v34_v1 = vld [vmem:[%s67_s0 + $0x2] ss:$4 sm:%s14_s9]  }
   0x2   :  { %9 = vrot.lane.b32.xlu0 %v33_v0, %s39_s10  ;;  %v35_v2 = vld [vmem:[%s67_s0 + $0x1] ss:$4 sm:%s21_s11]   ;;  %s2_s16 = smov 3  ;;  %s40_s17 = smov 32  }
   0x3   :  { %23 = vrot.lane.b32.xlu1 %v35_v2, %s40_s17  ;;  %v3_v3 = vld [vmem:[%s67_s0] ss:$4 sm:%s2_s16]   ;;  %s41_s0 = smov 64  }
   0x4   :  { %5 = vst.msk [vmem:[#allocation0] sm:$0x3] %vm4_vm0, %v3_v3  }
   0x6   :  { %16 = vrot.lane.b32.xlu0 %v34_v1, %s41_s0 }
  0x74   :  { %v10_v4 = vpop.permute.xlu0 %9  }
  0x75   :  { %12 = vst.msk [vmem:[#allocation0] sm:$0x3] %vm11_vm1, %v10_v4   ;;  %v24_v5 = vpop.permute.xlu1 %23  }
  0x78   :  { %v17_v6 = vpop.permute.xlu0 %16  }
  0x79   :  { %19 = vst.msk [vmem:[#allocation0] sm:$0x3] %vm18_vm2, %v17_v6  }
  0x7a   :  { %26 = vst.msk [vmem:[#allocation0] sm:$0x3] %vm25_vm3, %v24_v5  }
  0x81   :  { %v30_v7 = vld [vmem:[#allocation0] sm:$0x3] }
  0x82   :  { %32 = vst [vmem:[%s68_s1] sm:$0x3] %v30_v7 }

// kernel: neg.5
= control target key start
LH: loop header
LB: loop body
LE: loop exit
PB: predicated region body
PF: predicated region fallthrough
CT: control target
= control target key end

     0   :  { %s24_s0 = inlined_call_operand.vmem [shape: f32[256], index: 0, kind: input, shape index: {}]   ;;  %s25_s1 = inlined_call_operand.vmem [shape: f32[256], index: 1, kind: output, shape index: {}]  }
   0x1   :  { %v2_v0 = vld [vmem:[%s24_s0] sm:$0x3] }
   0x2   :  { %v5_v1 = vxor.u32 2147483648, %v2_v0 }
   0x4   :  { %7 = vst [vmem:[%s25_s1] sm:$0x3] %v5_v1 }

// kernel: backbone_frets_forward.1
= control target key start
LH: loop header
LB: loop body
LE: loop exit
PB: predicated region body
PF: predicated region fallthrough
CT: control target
= control target key end

     0   :  { %vm52_vm0 = vcmask 1043456   ;;  %v1343_v5 = vmov 0   ;;  %vm48_vm1 = vcmask 64512   ;;  %s1688_s0 = inlined_call_operand.vmem [shape: f32[8,8], index: 0, kind: input, shape index: {}]   ;;  %s1689_s1 = inlined_call_operand.vmem [shape: bf16[8,768], index: 1, kind: input, shape index: {}]   ;;  %s1690_s2 = inlined_call_operand.vmem [shape: bf16[512,256], index: 2, kind: input, shape index: {}]   ;;  %s1691_s3 = inlined_call_operand.vmem [shape: f32[3,512], index: 3, kind: input, shape index: {}]   ;;  %s1692_s4 = inlined_call_operand.vmem [shape: bf16[256,128], index: 4, kind: input, shape index: {}]   ;;  %s1693_s5 = inlined_call_operand.vmem [shape: bf16[32,128], index: 5, kind: input, shape index: {}]   ;;  %s1694_s6 = inlined_call_operand.vmem [shape: f32[2,128], index: 6, kind: input, shape index: {}]   ;;  %s1695_s7 = inlined_call_operand.hbm [shape: f32[2,128], index: 7, kind: output, shape index: {}]  }
   0x1   :  { %v30_v0 = vld [vmem:[%s1689_s1] sm:$0xff]  ;;  %v31_v2 = vld [vmem:[%s1689_s1 + $0x8] sm:$0xff]  ;;  %103 = vmatprep.mubr.bf16.mxu0 %v1343_v5  ;;  %v32_v7 = vld [vmem:[%s1689_s1 + $0x10] sm:$0xff] }
   0x2   :  { %v28_v1 = vld [vmem:[%s1688_s0] sm:$0xff]  ;;  %v1053_v3 = vcombine.high %v30_v0, %v30_v0  ;;  %v1052_v4 = vcombine.low %v30_v0, %v30_v0  ;;  %v1055_v6 = vcombine.high %v31_v2, %v31_v2  ;;  %v1054_v8 = vcombine.low %v31_v2, %v31_v2  ;;  %v1211_v15 = vld [vmem:[%s1690_s2 + $0x14] ss:$8 sps:$4 sm:$0xff]   ;;  %v1216_v16 = vld [vmem:[%s1690_s2 + $0x10] ss:$8 sps:$4 sm:$0xff]  }
   0x3   :  { %v1205_v9 = vld [vmem:[%s1690_s2 + $0x4] ss:$8 sps:$4 sm:$0xff]   ;;  %v29_v11 = vpack.c.bf16 %v28_v1, %v28_v1  ;;  %v1210_v12 = vld [vmem:[%s1690_s2] ss:$8 sps:$4 sm:$0xff]   ;;  %v1057_v14 = vcombine.high %v32_v7, %v32_v7  ;;  %v1056_v18 = vcombine.low %v32_v7, %v32_v7  ;;  %v1223_v20 = vld [vmem:[%s1690_s2 + $0x34] ss:$8 sps:$4 sm:$0xff]  }
   0x4   :  { %1058 = vmatprep.subr.msk.bf16.mxu0 %vm52_vm0, %v1053_v3  ;;  %v54_v10 = vsel %vm52_vm0, %v1052_v4, 0  ;;  %694 = vmatprep.subr.bf16.mxu1 %v1205_v9  ;;  %v60_v13 = vsel %vm52_vm0, %v1054_v8, 0  ;;  %v1217_v17 = vld [vmem:[%s1690_s2 + $0x24] ss:$8 sps:$4 sm:$0xff]   ;;  %v1222_v19 = vld [vmem:[%s1690_s2 + $0x20] ss:$8 sps:$4 sm:$0xff]  }
   0x5   :  { %72 = vmatpush1.bf16.msra.mxu0 %v54_v10  ;;  %695 = vmatpush1.bf16.msra.mxu1 %v1210_v12  ;;  %v66_v21 = vsel %vm52_vm0, %v1056_v18, 0  ;;  %v1209_v22 = vld [vmem:[%s1690_s2 + $0x104] ss:$8 sps:$4 sm:$0xff]   ;;  %v1228_v23 = vld [vmem:[%s1690_s2 + $0x30] ss:$8 sps:$4 sm:$0xff]  }
   0x6   :  { %1060 = vmatprep.subr.msk.bf16.mxu0 %vm52_vm0, %v1055_v6  ;;  %696 = vmatprep.subr.bf16.mxu1 %v1211_v15  ;;  %v1229_v24 = vld [vmem:[%s1690_s2 + $0x44] ss:$8 sps:$4 sm:$0xff]   ;;  %v1234_v25 = vld [vmem:[%s1690_s2 + $0x40] ss:$8 sps:$4 sm:$0xff]   ;;  %v1235_v26 = vld [vmem:[%s1690_s2 + $0x54] ss:$8 sps:$4 sm:$0xff]  }
   0x7   :  { %v1207_v27 = vld [vmem:[%s1690_s2 + $0x100] ss:$8 sps:$4 sm:$0xff]   ;;  %v1215_v28 = vld [vmem:[%s1690_s2 + $0x114] ss:$8 sps:$4 sm:$0xff]   ;;  %v1240_v29 = vld [vmem:[%s1690_s2 + $0x50] ss:$8 sps:$4 sm:$0xff]  }
   0x8   :  { %1059 = vmatmul.mubr.msk.bf16.vlgmr.msra.gmra.mrb[0].mxu0 %vm48_vm1, %v29_v11  ;;  %v1241_v30 = vld [vmem:[%s1690_s2 + $0x64] ss:$8 sps:$4 sm:$0xff]   ;;  %v1213_v31 = vld [vmem:[%s1690_s2 + $0x110] ss:$8 sps:$4 sm:$0xff]   ;;  %v1246_v33 = vld [vmem:[%s1690_s2 + $0x60] ss:$8 sps:$4 sm:$0xff]  }
   0x9   :  { %113 = vmatpush1.bf16.msra.mxu0 %v60_v13  ;;  %144 = vmatprep.mubr.bf16.mxu0 %v1343_v5  ;;  %v1221_v32 = vld [vmem:[%s1690_s2 + $0x124] ss:$8 sps:$4 sm:$0xff]   ;;  %v1219_v34 = vld [vmem:[%s1690_s2 + $0x120] ss:$8 sps:$4 sm:$0xff]   ;;  %v1227_v35 = vld [vmem:[%s1690_s2 + $0x134] ss:$8 sps:$4 sm:$0xff]  }
   0xa   :  { %1062 = vmatprep.subr.msk.bf16.mxu0 %vm52_vm0, %v1057_v14  ;;  %697 = vmatpush1.bf16.msra.mxu1 %v1216_v16  ;;  %v1247_v36 = vld [vmem:[%s1690_s2 + $0x74] ss:$8 sps:$4 sm:$0xff]   ;;  %v1252_v37 = vld [vmem:[%s1690_s2 + $0x70] ss:$8 sps:$4 sm:$0xff]   ;;  %v1253_v38 = vld [vmem:[%s1690_s2 + $0x84] ss:$8 sps:$4 sm:$0xff]  }
   0xb   :  { %698 = vmatprep.subr.bf16.mxu1 %v1217_v17  ;;  %v1225_v39 = vld [vmem:[%s1690_s2 + $0x130] ss:$8 sps:$4 sm:$0xff]   ;;  %v1233_v40 = vld [vmem:[%s1690_s2 + $0x144] ss:$8 sps:$4 sm:$0xff]   ;;  %v1258_v41 = vld [vmem:[%s1690_s2 + $0x80] ss:$8 sps:$4 sm:$0xff]  }
   0xc   :  { %v1259_v42 = vld [vmem:[%s1690_s2 + $0x94] ss:$8 sps:$4 sm:$0xff]   ;;  %v1231_v43 = vld [vmem:[%s1690_s2 + $0x140] ss:$8 sps:$4 sm:$0xff]   ;;  %v1264_v45 = vld [vmem:[%s1690_s2 + $0x90] ss:$8 sps:$4 sm:$0xff]  }
   0xd   :  { %v1239_v44 = vld [vmem:[%s1690_s2 + $0x154] ss:$8 sps:$4 sm:$0xff]   ;;  %v1237_v46 = vld [vmem:[%s1690_s2 + $0x150] ss:$8 sps:$4 sm:$0xff]   ;;  %v1245_v47 = vld [vmem:[%s1690_s2 + $0x164] ss:$8 sps:$4 sm:$0xff]  }
   0xe   :  { %699 = vmatpush1.bf16.msra.mxu1 %v1222_v19  ;;  %v1243_v48 = vld [vmem:[%s1690_s2 + $0x160] ss:$8 sps:$4 sm:$0xff]   ;;  %v1251_v49 = vld [vmem:[%s1690_s2 + $0x174] ss:$8 sps:$4 sm:$0xff]   ;;  %v1249_v50 = vld [vmem:[%s1690_s2 + $0x170] ss:$8 sps:$4 sm:$0xff]  }
   0xf   :  { %700 = vmatprep.subr.bf16.mxu1 %v1223_v20 }
  0x10   :  { %1061 = vmatmul.mubr.msk.bf16.vlgmr.msra.gmra.mrb[4].mxu0 %vm48_vm1, %v29_v11 }
  0x11   :  { %154 = vmatpush1.bf16.msra.mxu0 %v66_v21  ;;  %185 = vmatprep.mubr.bf16.mxu0 %v1343_v5 }
  0x12   :  { %735 = vmatprep.subr.bf16.mxu0 %v1209_v22  ;;  %701 = vmatpush1.bf16.msra.mxu1 %v1228_v23 }
  0x13   :  { %702 = vmatprep.subr.bf16.mxu1 %v1229_v24 }
  0x16   :  { %703 = vmatpush1.bf16.msra.mxu1 %v1234_v25 }
  0x17   :  { %704 = vmatprep.subr.bf16.mxu1 %v1235_v26 }
  0x18   :  { %1063 = vmatmul.mubr.msk.bf16.vlgmr.msra.gmra.mrb[8].mxu0 %vm48_vm1, %v29_v11 }
  0x19   :  { %736 = vmatpush1.bf16.msra.mxu0 %v1207_v27 }
  0x1a   :  { %737 = vmatprep.subr.bf16.mxu0 %v1215_v28  ;;  %705 = vmatpush1.bf16.msra.mxu1 %v1240_v29 }
  0x1b   :  { %706 = vmatprep.subr.bf16.mxu1 %v1241_v30 }
  0x1d   :  { %738 = vmatpush1.bf16.msra.mxu0 %v1213_v31 }
  0x1e   :  { %739 = vmatprep.subr.bf16.mxu0 %v1221_v32  ;;  %707 = vmatpush1.bf16.msra.mxu1 %v1246_v33 }
  0x1f   :  { %708 = vmatprep.subr.bf16.mxu1 %v1247_v36 }
  0x21   :  { %740 = vmatpush1.bf16.msra.mxu0 %v1219_v34 }
  0x22   :  { %741 = vmatprep.subr.bf16.mxu0 %v1227_v35  ;;  %709 = vmatpush1.bf16.msra.mxu1 %v1252_v37 }
  0x23   :  { %710 = vmatprep.subr.bf16.mxu1 %v1253_v38 }
  0x25   :  { %742 = vmatpush1.bf16.msra.mxu0 %v1225_v39 }
  0x26   :  { %743 = vmatprep.subr.bf16.mxu0 %v1233_v40  ;;  %711 = vmatpush1.bf16.msra.mxu1 %v1258_v41 }
  0x27   :  { %712 = vmatprep.subr.bf16.mxu1 %v1259_v42 }
  0x29   :  { %744 = vmatpush1.bf16.msra.mxu0 %v1231_v43 }
  0x2a   :  { %745 = vmatprep.subr.bf16.mxu0 %v1239_v44  ;;  %713 = vmatpush1.bf16.msra.mxu1 %v1264_v45 }
  0x2d   :  { %746 = vmatpush1.bf16.msra.mxu0 %v1237_v46 }
  0x2e   :  { %747 = vmatprep.subr.bf16.mxu0 %v1245_v47 }
  0x31   :  { %748 = vmatpush1.bf16.msra.mxu0 %v1243_v48 }
  0x32   :  { %12 = vsyncpa [#allocation3], 0  ;;  %749 = vmatprep.subr.bf16.mxu0 %v1251_v49  ;;  %v1257_v51 = vld [vmem:[%s1690_s2 + $0x184] ss:$8 sps:$4 sm:$0xff]   ;;  %v1255_v52 = vld [vmem:[%s1690_s2 + $0x180] ss:$8 sps:$4 sm:$0xff]   ;;  %v196_v16 = vlaneseq }
  0x33   :  { %v1263_v53 = vld [vmem:[%s1690_s2 + $0x194] ss:$8 sps:$4 sm:$0xff]   ;;  %v1261_v54 = vld [vmem:[%s1690_s2 + $0x190] ss:$8 sps:$4 sm:$0xff]   ;;  %v1265_v55 = vld [vmem:[%s1690_s2 + $0xa4] ss:$8 sps:$4 sm:$0xff]  }
  0x34   :  { %v1269_v56 = vld [vmem:[%s1690_s2 + $0x1a4] ss:$8 sps:$4 sm:$0xff]   ;;  %v1267_v57 = vld [vmem:[%s1690_s2 + $0x1a0] ss:$8 sps:$4 sm:$0xff]   ;;  %714 = vmatprep.subr.bf16.mxu1 %v1265_v55  ;;  %v1271_v59 = vld [vmem:[%s1690_s2 + $0xb4] ss:$8 sps:$4 sm:$0xff]  }
  0x35   :  { %750 = vmatpush1.bf16.msra.mxu0 %v1249_v50  ;;  %v1270_v58 = vld [vmem:[%s1690_s2 + $0xa0] ss:$8 sps:$4 sm:$0xff]   ;;  %v1273_v60 = vld [vmem:[%s1690_s2 + $0x1b0] ss:$8 sps:$4 sm:$0xff]   ;;  %v1275_v61 = vld [vmem:[%s1690_s2 + $0x1b4] ss:$8 sps:$4 sm:$0xff]  }
  0x36   :  { %751 = vmatprep.subr.bf16.mxu0 %v1257_v51  ;;  %715 = vmatpush1.bf16.msra.mxu1 %v1270_v58  ;;  %v1276_v62 = vld [vmem:[%s1690_s2 + $0xb0] ss:$8 sps:$4 sm:$0xff]   ;;  %v1277_v63 = vld [vmem:[%s1690_s2 + $0xc4] ss:$8 sps:$4 sm:$0xff]   ;;  %v1279_v1 = vld [vmem:[%s1690_s2 + $0x1c0] ss:$8 sps:$4 sm:$0xff]  }
  0x37   :  { %716 = vmatprep.subr.bf16.mxu1 %v1271_v59  ;;  %v1281_v0 = vld [vmem:[%s1690_s2 + $0x1c4] ss:$8 sps:$4 sm:$0xff]   ;;  %v1282_v2 = vld [vmem:[%s1690_s2 + $0xc0] ss:$8 sps:$4 sm:$0xff]   ;;  %v1283_v3 = vld [vmem:[%s1690_s2 + $0xd4] ss:$8 sps:$4 sm:$0xff]  }
  0x38   :  { %v1287_v4 = vld [vmem:[%s1690_s2 + $0x1d4] ss:$8 sps:$4 sm:$0xff]   ;;  %v1285_v5 = vld [vmem:[%s1690_s2 + $0x1d0] ss:$8 sps:$4 sm:$0xff]   ;;  %v1289_v7 = vld [vmem:[%s1690_s2 + $0xe4] ss:$8 sps:$4 sm:$0xff]  }
  0x39   :  { %752 = vmatpush1.bf16.msra.mxu0 %v1255_v52  ;;  %v1288_v6 = vld [vmem:[%s1690_s2 + $0xd0] ss:$8 sps:$4 sm:$0xff]   ;;  %v1293_v8 = vld [vmem:[%s1690_s2 + $0x1e4] ss:$8 sps:$4 sm:$0xff]   ;;  %v1291_v9 = vld [vmem:[%s1690_s2 + $0x1e0] ss:$8 sps:$4 sm:$0xff]  }
  0x3a   :  { %753 = vmatprep.subr.bf16.mxu0 %v1263_v53  ;;  %717 = vmatpush1.bf16.msra.mxu1 %v1276_v62  ;;  %v1294_v10 = vld [vmem:[%s1690_s2 + $0xe0] ss:$8 sps:$4 sm:$0xff]   ;;  %v1295_v11 = vld [vmem:[%s1690_s2 + $0xf4] ss:$8 sps:$4 sm:$0xff]   ;;  %v1297_v13 = vld [vmem:[%s1690_s2 + $0x1f0] ss:$8 sps:$4 sm:$0xff]  }
  0x3b   :  { %718 = vmatprep.subr.bf16.mxu1 %v1277_v63  ;;  %v1299_v12 = vld [vmem:[%s1690_s2 + $0x1f4] ss:$8 sps:$4 sm:$0xff]   ;;  %v1300_v14 = vld [vmem:[%s1690_s2 + $0xf0] ss:$8 sps:$4 sm:$0xff]   ;;  %v1301_v15 = vld [vmem:[%s1692_s4 + $0x40] sm:$0xff]   ;;  %v197_v17 = vshrl.u32 %v196_v16, 7 }
  0x3c   :  { %v194_v19 = vld [vmem:[%s1691_s3] ss:$4 sm:$0xf]  ;;  %v1064_v23 = vld [vmem:[%s1691_s3 + $0x1] ss:$4 sm:$0xf] }
  0x3d   :  { %754 = vmatpush1.bf16.msra.mxu0 %v1261_v54  ;;  %v198_v20 = vsub.s32 0, %v197_v17  ;;  %v206_v21 = vsub.s32 2, %v197_v17  ;;  %v202_v24 = vsub.s32 1, %v197_v17  ;;  %v210_v25 = vsub.s32 3, %v197_v17  ;;  %s1345_s22 = smov 32   ;;  %s1346_s23 = smov 96  }
  0x3e   :  { %755 = vmatprep.subr.bf16.mxu0 %v1269_v56  ;;  %719 = vmatpush1.bf16.msra.mxu1 %v1282_v2  ;;  %v1065_v32 = vld [vmem:[%s1691_s3 + $0x2] ss:$4 sm:$0xf]  ;;  %vm1347_vm10 = vmmov 0   ;;  %s1348_s24 = smov 64   ;;  %vm993_vm12 = vcmask 261120  }
  0x3f   :  { %720 = vmatprep.subr.bf16.mxu1 %v1283_v3  ;;  %v199_v28 = vrot.slane %v194_v19, %v198_v20  ;;  %v234_v29 = vrot.slane %v1064_v23, %v206_v21  ;;  %v207_v30 = vrot.slane %v194_v19, %v206_v21  ;;  %v226_v31 = vrot.slane %v1064_v23, %v198_v20  ;;  %s1349_s28 = smov [#allocation2]  }
  0x40   :  { %v203_v33 = vrot.slane %v194_v19, %v202_v24  ;;  %v238_v34 = vrot.slane %v1064_v23, %v210_v25  ;;  %v211_v35 = vrot.slane %v194_v19, %v210_v25  ;;  %v230_v36 = vrot.slane %v1064_v23, %v202_v24  ;;  %v1303_v23 = vld [vmem:[%s1692_s4 + $0x48] sm:$0xff]   ;;  %s1044_s29 = sshll.u32 %s1349_s28, 4  ;;  %s1045_s29 = int_to_ptr.vmem [resolvable:$true] %s1044_s29 }
  0x41   :  { %756 = vmatpush1.bf16.msra.mxu0 %v1267_v57  ;;  %v257_v38 = vrot.slane %v1065_v32, %v198_v20  ;;  %v265_v39 = vrot.slane %v1065_v32, %v206_v21  ;;  %v261_v40 = vrot.slane %v1065_v32, %v202_v24  ;;  %v269_v41 = vrot.slane %v1065_v32, %v210_v25  ;;  %v1302_v20 = vld [vmem:[%s1692_s4] sm:$0xff]   ;;  %s1319_s30 = scalar_lea.vmem %s1045_s29, 32  ;;  %p1324_p1 = scmp.lt.s32.totalorder %s1045_s29, %s1045_s29 }
  0x42   :  { %757 = vmatprep.subr.bf16.mxu0 %v1275_v61  ;;  %721 = vmatpush1.bf16.msra.mxu1 %v1288_v6  ;;  %v1309_v32 = vld [vmem:[%s1692_s4 + $0x60] sm:$0xff]   ;;  %p1320_p0 = scmp.ne.s32.totalorder %s1045_s29, %s1319_s30  ;;  %p1325_p2 = scmp.lt.s32.totalorder %s1319_s30, %s1319_s30 }
  0x43   :  { %722 = vmatprep.subr.bf16.mxu1 %v1289_v7 }
  0x44   :  { %p1326_p3 = por %p1325_p2, %p1324_p1 }
  0x45   :  { %758 = vmatpush1.bf16.msra.mxu0 %v1273_v60 }
  0x46   :  { %759 = vmatprep.subr.bf16.mxu0 %v1281_v0  ;;  %723 = vmatpush1.bf16.msra.mxu1 %v1294_v10  ;;  %p1327_p4 = pnand %p1326_p3, %p1320_p0 }
  0x47   :  { %724 = vmatprep.subr.bf16.mxu1 %v1295_v11 }
  0x49   :  { %760 = vmatpush1.bf16.msra.mxu0 %v1279_v1 }
  0x4a   :  { %761 = vmatprep.subr.bf16.mxu0 %v1287_v4  ;;  %725 = vmatpush1.bf16.msra.mxu1 %v1300_v14 }
  0x4b   :  { %1155 = vmatprep.subr.bf16.mxu1 %v1301_v15 }
  0x4d   :  { %762 = vmatpush1.bf16.msra.mxu0 %v1285_v5 }
  0x4e   :  { %763 = vmatprep.subr.bf16.mxu0 %v1293_v8 }
  0x51   :  { %764 = vmatpush1.bf16.msra.mxu0 %v1291_v9 }
  0x52   :  { %765 = vmatprep.subr.bf16.mxu0 %v1299_v12 }
  0x55   :  { %766 = vmatpush1.bf16.msra.mxu0 %v1297_v13 }
  0xdb   :  { %v105_v18 = vpop.f32.mrb[0].mxu0 }
  0xdc   :  { %v107_v22 = vpop.f32.mrb[1].mxu0  ;;  %v216_v42 = vmul.f32 %v199_v28, %v105_v18  ;;  %v245_v43 = vmul.f32 %v234_v29, %v105_v18  ;;  %v1305_v28 = vld [vmem:[%s1692_s4 + $0x50] sm:$0xff]  }
  0xdd   :  { %v109_v26 = vpop.f32.mrb[2].mxu0  ;;  %v217_v47 = vmul.f32 %v203_v33, %v107_v22  ;;  %v246_v48 = vmul.f32 %v238_v34, %v107_v22  ;;  %v1306_v29 = vld [vmem:[%s1692_s4 + $0x10] sm:$0xff]   ;;  %v1310_v33 = vld [vmem:[%s1692_s4 + $0x20] sm:$0xff]   ;;  %v1311_v34 = vld [vmem:[%s1692_s4 + $0x68] sm:$0xff]  }
  0xde   :  { %v110_v27 = vpop.f32.mrb[3].mxu0 }
  0xdf   :  { %v1304_v27 = vld [vmem:[%s1692_s4 + $0x8] sm:$0xff]  }
  0xe3   :  { %v146_v37 = vpop.f32.mrb[4].mxu0 }
  0xe4   :  { %v218_v44 = vmul.f32 %v207_v30, %v146_v37  ;;  %v243_v45 = vmul.f32 %v226_v31, %v146_v37  ;;  %v148_v46 = vpop.f32.mrb[5].mxu0  ;;  %v1307_v30 = vld [vmem:[%s1692_s4 + $0x58] sm:$0xff]   ;;  %v1314_v37 = vld [vmem:[%s1692_s4 + $0x30] sm:$0xff]  }
  0xe5   :  { %v219_v49 = vmul.f32 %v211_v35, %v148_v46  ;;  %v244_v50 = vmul.f32 %v230_v36, %v148_v46  ;;  %v150_v51 = vpop.f32.mrb[6].mxu0  ;;  %v1308_v31 = vld [vmem:[%s1692_s4 + $0x18] sm:$0xff]   ;;  %v1312_v35 = vld [vmem:[%s1692_s4 + $0x28] sm:$0xff]   ;;  %v1313_v36 = vld [vmem:[%s1692_s4 + $0x70] sm:$0xff]  }
  0xe6   :  { %v247_v52 = vadd.f32 %v243_v45, %v216_v42  ;;  %v249_v53 = vadd.f32 %v245_v43, %v218_v44  ;;  %v151_v54 = vpop.f32.mrb[7].mxu0 }
  0xe7   :  { %v248_v55 = vadd.f32 %v244_v50, %v217_v47  ;;  %v250_v56 = vadd.f32 %v246_v48, %v219_v49 }
  0xe8   :  { %v274_v57 = vadd.f32 %v257_v38, %v247_v52  ;;  %v276_v58 = vadd.f32 %v265_v39, %v249_v53  ;;  %v1315_v38 = vld [vmem:[%s1692_s4 + $0x78] sm:$0xff]  }
  0xe9   :  { %v275_v59 = vadd.f32 %v261_v40, %v248_v55  ;;  %v277_v60 = vadd.f32 %v269_v41, %v250_v56  ;;  %v1316_v39 = vld [vmem:[%s1692_s4 + $0x38] sm:$0xff]   ;;  %v1317_v56 = vld [vmem:[%s1693_s5] sm:$0xff]  }
  0xea   :  { %v278_v61 = vmax.f32 %v274_v57, 0.0  ;;  %v280_v1 = vmax.f32 %v276_v58, 0.0 }
  0xeb   :  { %v279_v62 = vmax.f32 %v275_v59, 0.0  ;;  %v281_v63 = vmax.f32 %v277_v60, 0.0  ;;  %v1615_v0 = vpop.f32.mrb[8].mxu0  ;;  %v1344_v59 = vmov 0.0  }
  0xec   :  { %vm282_vm2 = vcmp.gt.f32.partialorder %v278_v61, 0.01  ;;  %v1066_v2 = vadd.f32 -0.01, %v278_v61  ;;  %vm290_vm4 = vcmp.lt.f32.partialorder %v278_v61, -0.01  ;;  %1180 = vmatprep.subr.bf16.mxu0 %v1344_v59 }
  0xed   :  { %v1067_v3 = vadd.f32 -0.01, %v279_v62  ;;  %vm291_vm3 = vcmp.lt.f32.partialorder %v279_v62, -0.01  ;;  %vm283_vm5 = vcmp.gt.f32.partialorder %v279_v62, 0.01 }
  0xee   :  { %v295_v4 = vadd.f32 0.01, %v279_v62  ;;  %v1069_v5 = vadd.f32 -0.01, %v281_v63  ;;  %vm293_vm6 = vcmp.lt.f32.partialorder %v281_v63, -0.01 }
  0xef   :  { %v297_v6 = vadd.f32 0.01, %v281_v63  ;;  %v294_v7 = vadd.f32 0.01, %v278_v61  ;;  %vm285_vm7 = vcmp.gt.f32.partialorder %v281_v63, 0.01 }
  0xf0   :  { %v299_v8 = vsel %vm291_vm3, %v295_v4, 0.0  ;;  %v1068_v9 = vadd.f32 -0.01, %v280_v1  ;;  %v189_v10 = vpop.f32.mrb[9].mxu0  ;;  %vm292_vm8 = vcmp.lt.f32.partialorder %v280_v1, -0.01 }
  0xf1   :  { %v303_v11 = vsel %vm283_vm5, %v1067_v3, %v299_v8  ;;  %v301_v12 = vsel %vm293_vm6, %v297_v6, 0.0  ;;  %v298_v13 = vsel %vm290_vm4, %v294_v7, 0.0  ;;  %v191_v14 = vpop.f32.mrb[10].mxu0  ;;  %v296_v18 = vadd.f32 0.01, %v280_v1  ;;  %v1318_v63 = vld [vmem:[%s1693_s5 + $0x8] sm:$0xff]  }
  0xf2   :  { %v307_v15 = vpack.c.bf16 %v303_v11, %v303_v11  ;;  %v305_v16 = vsel %vm285_vm7, %v1069_v5, %v301_v12  ;;  %v302_v17 = vsel %vm282_vm2, %v1066_v2, %v298_v13  ;;  %v192_v19 = vpop.f32.mrb[11].mxu0  ;;  %vm284_vm9 = vcmp.gt.f32.partialorder %v280_v1, 0.01  ;;  %v1150_v1 = vld [vmem:[%s1694_s6] ss:$0 sm:$0xff] }
  0xf3   :  { %v309_v21 = vpack.c.bf16 %v305_v16, %v305_v16  ;;  %v306_v22 = vpack.c.bf16 %v302_v17, %v302_v17  ;;  %v300_v24 = vsel %vm292_vm8, %v296_v18, 0.0  ;;  %v1151_v12 = vld [vmem:[%s1694_s6 + $0x1] ss:$0 sm:$0xff] }
  0xf4   :  { %726 = vmatprep.mubr.bf16.mxu1 %v307_v15  ;;  %v304_v25 = vsel %vm284_vm9, %v1068_v9, %v300_v24 }
  0xf5   :  { %767 = vmatprep.mubr.bf16.mxu0 %v309_v21  ;;  %727 = vmatmul.mubr.bf16.vlgmr.msra.gmra.mrb[0].mxu1 %v306_v22  ;;  %v308_v26 = vpack.c.bf16 %v304_v25, %v304_v25 }
  0xf6   :  { %1156 = vmatpush3.bf16.msra.mxu1 %v1302_v20 }
  0xf7   :  { %1157 = vmatprep.subr.bf16.mxu1 %v1303_v23  ;;  %768 = vmatmul.mubr.bf16.vlgmr.msra.gmra.mrb[12].mxu0 %v308_v26 }
  0xf8   :  { %1181 = vmatpush3.bf16.msra.mxu0 %v1317_v56  ;;  %1184 = vmatprep.mubr.msk.bf16.mxu0 %vm1347_vm10, %v1344_v59 }
  0xf9   :  { %1182 = vmatprep.subr.bf16.mxu0 %v1344_v59 }
  0xfa   :  { %1158 = vmatpush3.bf16.msra.mxu1 %v1304_v27 }
  0xfb   :  { %1159 = vmatprep.subr.bf16.mxu1 %v1305_v28 }
  0xfc   :  { %1183 = vmatpush3.bf16.msra.mxu0 %v1318_v63 }
  0xfe   :  { %1160 = vmatpush3.bf16.msra.mxu1 %v1306_v29 }
  0xff   :  { %1161 = vmatprep.subr.bf16.mxu1 %v1307_v30 }
 0x102   :  { %1162 = vmatpush3.bf16.msra.mxu1 %v1308_v31 }
 0x103   :  { %1163 = vmatprep.subr.bf16.mxu1 %v1309_v32 }
 0x106   :  { %1164 = vmatpush3.bf16.msra.mxu1 %v1310_v33 }
 0x107   :  { %1165 = vmatprep.subr.bf16.mxu1 %v1311_v34 }
 0x10a   :  { %1166 = vmatpush3.bf16.msra.mxu1 %v1312_v35 }
 0x10b   :  { %1167 = vmatprep.subr.bf16.mxu1 %v1313_v36 }
 0x10e   :  { %1168 = vmatpush3.bf16.msra.mxu1 %v1314_v37 }
 0x10f   :  { %1169 = vmatprep.subr.bf16.mxu1 %v1315_v38 }
 0x112   :  { %1170 = vmatpush3.bf16.msra.mxu1 %v1316_v39 }
 0x1c8   :  { %v728_v40 = vpop.f32.mrb[0].mxu1 }
 0x1c9   :  { %v729_v41 = vadd.f32 %v728_v40, %v1615_v0  ;;  %v730_v42 = vpop.f32.mrb[1].mxu1 }
 0x1ca   :  { %v731_v43 = vadd.f32 %v730_v42, %v189_v10  ;;  %v732_v44 = vpop.f32.mrb[2].mxu1  ;;  %v769_v45 = vpop.f32.mrb[12].mxu0 }
 0x1cb   :  { %v733_v46 = vpop.f32.mrb[3].mxu1  ;;  %v770_v47 = vadd.f32 %v769_v45, %v729_v41  ;;  %v771_v48 = vpop.f32.mrb[13].mxu0 }
 0x1cc   :  { %v772_v49 = vadd.f32 %v771_v48, %v731_v43  ;;  %v773_v50 = vpop.f32.mrb[14].mxu0 }
 0x1cd   :  { %v774_v51 = vpop.f32.mrb[15].mxu0  ;;  %v776_v53 = vpack.c.bf16 %v770_v47, %v770_v47 }
 0x1ce   :  { %v777_v52 = vpack.c.bf16 %v772_v49, %v772_v49 }
 0x1d0   :  { %938 = vmatprep.mubr.bf16.mxu1 %v777_v52 }
 0x1d1   :  { %939 = vmatmul.mubr.bf16.vlgmr.msra.gmra.mrb[4].mxu1 %v776_v53 }
 0x2a4   :  { %v1171_v54 = vpop.f32.mrb[4].mxu1 }
 0x2a5   :  { %v1172_v55 = vpop.f32.mrb[5].mxu1 }
 0x2a6   :  { %v1173_v57 = vadd.f32 %v1172_v55, %v1171_v54  ;;  %v1174_v58 = vpop.f32.mrb[6].mxu1 }
 0x2a7   :  { %v1175_v60 = vpop.f32.mrb[7].mxu1 }
 0x2a8   :  { %v963_v61 = vrot.slane %v1173_v57, 6  ;;  %v953_v62 = vrot.slane %v1173_v57, 2  ;;  %v958_v0 = vrot.slane %v1173_v57, 4  ;;  %v951_v3 = vadd.f32 %v1173_v57, %v1150_v1 }
 0x2aa   :  { %964 = vrot.lane.b32.xlu1 %v963_v61, %s1345_s22  ;;  %954 = vrot.lane.b32.xlu0 %v953_v62, %s1346_s23 }
 0x2ae   :  { %959 = vrot.lane.b32.xlu0 %v958_v0, %s1348_s24 }
 0x31c   :  { %v955_v2 = vpop.permute.xlu0 %954  ;;  %v965_v7 = vpop.permute.xlu1 %964 }
 0x31d   :  { %v957_v4 = vadd.f32 %v955_v2, %v951_v3 }
 0x320   :  { %v960_v5 = vpop.permute.xlu0 %959 }
 0x321   :  { %v962_v6 = vadd.f32 %v960_v5, %v957_v4 }
 0x323   :  { %v967_v8 = vadd.f32 %v965_v7, %v962_v6 }
 0x325   :  { %vm968_vm11 = vcmp.gt.f32.partialorder %v967_v8, 0.0  ;;  %v969_v9 = vmul.f32 0.01, %v967_v8 }
 0x327   :  { %v970_v10 = vsel %vm968_vm11, %v967_v8, %v969_v9 }
 0x328   :  { %v971_v11 = vpack.c.bf16 %v970_v10, %v970_v10 }
 0x32a   :  { %1185 = vmatmul.mubr.msk.bf16.vlgmr.msra.gmra.mrb[16].mxu0 %vm993_vm12, %v971_v11 }
 0x3fd   :  { %v1031_v13 = vpop.f32.mrb[16].mxu0 }
 0x3fe   :  { %v1032_v14 = vadd.f32 %v1151_v12, %v1031_v13  ;;  %v1186_v15 = vpop.f32.mrb[17].mxu0 }
 0x3ff   :  { %v1034_v16 = vpop.f32.mrb[18].mxu0 }
 0x400   :  { %1037 = vst [vmem:[#allocation2] sm:$0x3] %v1032_v14  ;;  %v1187_v17 = vpop.f32.mrb[19].mxu0 }
 0x401   :  { %1330 = shalt.err (!%p1327_p4)
}
 0x402   :  { %s1331_s6 = scalar_lea.hbm %s1695_s7, 32 }
 0x403   :  { %p1332_p5 = scmp.ne.s32.totalorder %s1695_s7, %s1331_s6  ;;  %p1335_p6 = scmp.lt.u32.totalorder %s1331_s6, %s1695_s7 }
 0x405   :  { %p1337_p7 = pnand %p1335_p6, %p1332_p5 }
 0x407   :  { %1340 = shalt.err (!%p1337_p7)
}
 0x408   :  { %1047 = dma.vmem_to_hbm [thread:$0]  %s1045_s29, 32, %s1695_s7, [#allocation3]  }
 0x409   :  { %1341 = dma.done.wait [#allocation3], 32  }
 0x40a   :  { %1342 = vsyncadd [#allocation3], 4294967264 }
 0x40b   :  { %1051 = vsyncpa [#allocation3], 1 }

</bundles_post_ra>
